<compile_context>
chip_gen: v5e
topology: v5e:2x2
jax: 0.10.0
libtpu: 0.0.40
codegen_flags: <defaults>
</compile_context>

<pallas_src>
import numpy as np
import jax
import jax.numpy as jnp
from jax.experimental import pallas as pl
from jax.experimental.pallas import tpu as pltpu

NEG_SLOPE = 0.05   # LeakyReLU(0.05) as in the PyTorch module
KH = KW = 3        # module's hard-coded padding=2 + crop-by-overshoot is only
                   # shape-consistent for 3x3 filters (effective "same" pad=1)


# ----------------------------- Pallas kernel -------------------------------
def _make_pyramid_kernel(num_scales, H, W, C, F):
    S = num_scales

    def kernel(*refs):
        # refs: x, then per scale s=0..S-1: (prow, pcol, band, bias),
        #       then per scale s=1..S-1: (urow, ucol), then the output.
        x_ref = refs[0]
        scale_refs = refs[1:1 + 4 * S]
        up_refs = refs[1 + 4 * S:1 + 4 * S + 2 * (S - 1)]
        o_ref = refs[1 + 4 * S + 2 * (S - 1)]

        x = x_ref[0]                                           # (H, W*C) f32
        accum = None
        for scale in range(S - 1, -1, -1):
            prow_ref, pcol_ref, band_ref, bias_ref = scale_refs[4 * scale:4 * scale + 4]
            Hs, Ws = H >> scale, W >> scale

            # mean-pool columns by 2**scale + zero column halo:
            #   (H, W*C) @ (W*C, (Ws+2)*C) -> (H, (Ws+2)*C)
            xc = jnp.dot(x, pcol_ref[...], preferred_element_type=jnp.float32)

            # 3x3 conv as 3 accumulating block-band matmuls (one per kernel row).
            conv = None
            for dy in range(KH):
                # mean-pool rows, shift by dy, zero row halo:
                #   (Hs, H) @ (H, (Ws+2)*C) -> (Hs, (Ws+2)*C)
                win = jnp.dot(prow_ref[dy], xc, preferred_element_type=jnp.float32)
                # banded weight matmul (bf16 operands, f32 accumulation):
                #   (Hs, (Ws+2)*C) @ ((Ws+2)*C, Ws*F) -> (Hs, Ws*F)
                part = jnp.dot(win.astype(jnp.bfloat16), band_ref[dy],
                               preferred_element_type=jnp.float32)
                conv = part if conv is None else conv + part

            conv = conv + bias_ref[...]                         # (1, Ws*F) broadcast
            conv = jnp.where(conv >= 0.0, conv, NEG_SLOPE * conv)  # LeakyReLU(0.05)

            accum = conv if accum is None else accum + conv
            if scale > 0:
                urow_ref, ucol_ref = up_refs[2 * (scale - 1):2 * (scale - 1) + 2]
                # nearest-neighbor 2x upsample = two constant matmuls
                accum = jnp.dot(urow_ref[...], accum, preferred_element_type=jnp.float32)
                accum = jnp.dot(accum, ucol_ref[...], preferred_element_type=jnp.float32)

        o_ref[0] = (accum * (1.0 / S)).astype(o_ref.dtype)      # (H, W*F) dense store

    return kernel


# ----------------------- constant matrix construction -----------------------
def _pool_pad_col_matrix(W, C, scale):
    """(W*C, (Ws+2)*C): mean-pool columns by 2**scale + zero left/right halo cols."""
    k = 1 << scale
    Ws = W // k
    P = np.zeros((W * C, (Ws + 2) * C), np.float32)
    for j in range(Ws):
        for t in range(k):
            for c in range(C):
                P[(j * k + t) * C + c, (j + 1) * C + c] = 1.0 / k
    return P


def _pool_pad_row_matrices(H, scale):
    """(KH, Hs, H): for each dy, mean-pool rows by 2**scale, shift by dy, zero halo rows."""
    k = 1 << scale
    Hs = H // k
    P = np.zeros((KH, Hs, H), np.float32)
    for dy in range(KH):
        for i in range(Hs):
            r = i + dy - 1                       # padded-row index minus halo
            if 0 <= r < Hs:
                P[dy, i, r * k:(r + 1) * k] = 1.0 / k
    return P


def _upsample_matrices(Hs, Ws, F):
    """Nearest-neighbor 2x upsample as (2Hs,Hs) left and (Ws*F, 2Ws*F) right matmuls."""
    Ur = np.zeros((2 * Hs, Hs), np.float32)
    for i in range(Hs):
        Ur[2 * i, i] = 1.0
        Ur[2 * i + 1, i] = 1.0
    Uc = np.zeros((Ws * F, 2 * Ws * F), np.float32)
    for j in range(Ws):
        for f in range(F):
            Uc[j * F + f, (2 * j) * F + f] = 1.0
            Uc[j * F + f, (2 * j + 1) * F + f] = 1.0
    return Ur, Uc


def _band_matrices(w, Ws):
    """w: (KH, KW, C, F) -> (KH, (Ws+2)*C, Ws*F) bf16 block-band weight matrices.
    B[dy, (j+dx)*C + c, j*F + f] = w[dy, dx, c, f]."""
    KHs, KWs, C, F = w.shape
    M = np.zeros((KWs, Ws, Ws + 2), np.float32)
    for dx in range(KWs):
        for j in range(Ws):
            M[dx, j, j + dx] = 1.0
    B = jnp.einsum('djp,edcf->epcjf', jnp.asarray(M), w)   # (KH, Ws+2, C, Ws, F)
    return B.reshape(KHs, (Ws + 2) * C, Ws * F).astype(jnp.bfloat16)


# ------------------------------- wrapper -------------------------------------
def multi_scale_convolution(X_nchw, weights, biases, num_scales):
    """Forward pass of MultiScaleConvolution.  X_nchw: (N, C, H, W)."""
    N, C, H, W = X_nchw.shape
    F = weights[0].shape[-1]
    assert weights[0].shape[0] == KH and weights[0].shape[1] == KW, \
        "padding=2 + overshoot crop arithmetic only consistent for 3x3 filters"
    assert H % (1 << (num_scales - 1)) == 0 and W % (1 << (num_scales - 1)) == 0, \
        "spatial size must be divisible by 2**(num_scales-1)"

    # NCHW -> lane-friendly per-image row matrix (N, H, W*C)
    x_rows = jnp.transpose(X_nchw, (0, 2, 3, 1)).reshape(N, H, W * C)

    inputs = [x_rows]
    in_specs = [pl.BlockSpec((1, H, W * C), lambda n: (n, 0, 0))]

    def const_spec(arr):
        if arr.ndim == 2:
            return pl.BlockSpec(arr.shape, lambda n: (0, 0))
        return pl.BlockSpec(arr.shape, lambda n: (0, 0, 0))

    for s in range(num_scales):
        Ws = W >> s
        prow = jnp.asarray(_pool_pad_row_matrices(H, s))
        pcol = jnp.asarray(_pool_pad_col_matrix(W, C, s))
        band = _band_matrices(weights[s], Ws)
        brow = jnp.tile(biases[s], Ws).reshape(1, Ws * F).astype(jnp.float32)
        for a in (prow, pcol, band, brow):
            inputs.append(a)
            in_specs.append(const_spec(a))

    for s in range(1, num_scales):
        Hs, Ws = H >> s, W >> s
        Ur, Uc = _upsample_matrices(Hs, Ws, F)
        for a in (jnp.asarray(Ur), jnp.asarray(Uc)):
            inputs.append(a)
            in_specs.append(const_spec(a))

    kernel = _make_pyramid_kernel(num_scales, H, W, C, F)
    out_rows = pl.pallas_call(
        kernel,
        out_shape=jax.ShapeDtypeStruct((N, H, W * F), X_nchw.dtype),
        grid_spec=pltpu.PrefetchScalarGridSpec(
            num_scalar_prefetch=0,
            grid=(N,),
            in_specs=in_specs,
            out_specs=pl.BlockSpec((1, H, W * F), lambda n: (n, 0, 0)),
        ),
        compiler_params=pltpu.CompilerParams(
            dimension_semantics=("parallel",)),
    )(*inputs)

    # (N, H, W*F) -> NCHW
    return jnp.transpose(out_rows.reshape(N, H, W, F), (0, 3, 1, 2))


# --------------------------- pure-JAX reference ------------------------------
def reference_forward(X_nchw, weights, biases, num_scales):
    filter_size = weights[0].shape[0]
    overshoot = (filter_size - 1) // 2
    accum = 0.0
    for scale in range(num_scales - 1, -1, -1):
        x = X_nchw
        if scale > 0:
            s = 2 ** scale
            N, C, H, W = x.shape
            x = x.reshape(N, C, H // s, s, W // s, s).mean(axis=(3, 5))
        w_oihw = jnp.transpose(weights[scale], (3, 2, 0, 1))
        y = jax.lax.conv_general_dilated(
            x, w_oihw, (1, 1), [(2, 2), (2, 2)],
            dimension_numbers=("NCHW", "OIHW", "NCHW"),
            precision=jax.lax.Precision.HIGHEST)
        y = y + biases[scale][None, :, None, None]
        y = jnp.where(y >= 0, y, NEG_SLOPE * y)
        y = y[:, :, overshoot:-overshoot, overshoot:-overshoot]
        accum = accum + y
        if scale > 0:
            accum = jnp.repeat(jnp.repeat(accum, 2, axis=2), 2, axis=3)
    return accum / num_scales


# --------------------------------- main --------------------------------------
if __name__ == "__main__":
    N, num_channels, spatial_width = 2, 4, 16
    num_filters, num_scales, filter_size = 8, 3, 3

    key = jax.random.PRNGKey(0)
    keys = jax.random.split(key, 1 + 2 * num_scales)
    X = jax.random.normal(keys[0], (N, num_channels, spatial_width, spatial_width),
                          dtype=jnp.float32)

    # Deterministic Conv2d-style init: U(-1/sqrt(fan_in), 1/sqrt(fan_in)),
    # weights stored as (KH, KW, C, F).
    fan_in = num_channels * filter_size * filter_size
    bound = 1.0 / np.sqrt(fan_in)
    weights, biases = [], []
    for s in range(num_scales):
        w = jax.random.uniform(keys[1 + 2 * s],
                               (filter_size, filter_size, num_channels, num_filters),
                               minval=-bound, maxval=bound, dtype=jnp.float32)
        b = jax.random.uniform(keys[2 + 2 * s], (num_filters,),
                               minval=-bound, maxval=bound, dtype=jnp.float32)
        weights.append(w)
        biases.append(b)

    msc = jax.jit(multi_scale_convolution, static_argnums=(3,))
    out = jax.block_until_ready(msc(X, weights, biases, num_scales))
    assert out.shape == (N, num_filters, spatial_width, spatial_width)

    ref = jax.block_until_ready(reference_forward(X, weights, biases, num_scales))
    np.testing.assert_allclose(np.asarray(out), np.asarray(ref),
                               rtol=1e-2, atol=1e-2)
    print("KERNEL_OK")
</pallas_src>

<mosaic_0001>
module attributes {stable_mosaic.version = 11 : i64} {
  func.func @kernel(%arg0: i32, %arg1: memref<1x16x64xf32, #tpu.memory_space<vmem>>, %arg2: memref<3x16x16xf32, #tpu.memory_space<vmem>>, %arg3: memref<64x72xf32, #tpu.memory_space<vmem>>, %arg4: memref<3x72x128xbf16, #tpu.memory_space<vmem>>, %arg5: memref<1x128xf32, #tpu.memory_space<vmem>>, %arg6: memref<3x8x16xf32, #tpu.memory_space<vmem>>, %arg7: memref<64x40xf32, #tpu.memory_space<vmem>>, %arg8: memref<3x40x64xbf16, #tpu.memory_space<vmem>>, %arg9: memref<1x64xf32, #tpu.memory_space<vmem>>, %arg10: memref<3x4x16xf32, #tpu.memory_space<vmem>>, %arg11: memref<64x24xf32, #tpu.memory_space<vmem>>, %arg12: memref<3x24x32xbf16, #tpu.memory_space<vmem>>, %arg13: memref<1x32xf32, #tpu.memory_space<vmem>>, %arg14: memref<16x8xf32, #tpu.memory_space<vmem>>, %arg15: memref<64x128xf32, #tpu.memory_space<vmem>>, %arg16: memref<8x4xf32, #tpu.memory_space<vmem>>, %arg17: memref<32x64xf32, #tpu.memory_space<vmem>>, %arg18: memref<1x16x128xf32, #tpu.memory_space<vmem>>) attributes {dimension_semantics = [#tpu.dimension_semantics<parallel>], iteration_bounds = array<i64: 2>, scalar_prefetch = 0 : i64, scratch_operands = 0 : i64, tpu.core_type = #tpu.core_type<tc>, window_params = [{transform_indices = @transform_0, window_bounds = array<i64: 1, 16, 64>}, {pipeline_mode = #tpu.pipeline_mode<synchronous>, transform_indices = @transform_1, window_bounds = array<i64: 3, 16, 16>}, {pipeline_mode = #tpu.pipeline_mode<synchronous>, transform_indices = @transform_2, window_bounds = array<i64: 64, 72>}, {pipeline_mode = #tpu.pipeline_mode<synchronous>, transform_indices = @transform_3, window_bounds = array<i64: 3, 72, 128>}, {pipeline_mode = #tpu.pipeline_mode<synchronous>, transform_indices = @transform_4, window_bounds = array<i64: 1, 128>}, {pipeline_mode = #tpu.pipeline_mode<synchronous>, transform_indices = @transform_5, window_bounds = array<i64: 3, 8, 16>}, {pipeline_mode = #tpu.pipeline_mode<synchronous>, transform_indices = @transform_6, window_bounds = array<i64: 64, 40>}, {pipeline_mode = #tpu.pipeline_mode<synchronous>, transform_indices = @transform_7, window_bounds = array<i64: 3, 40, 64>}, {pipeline_mode = #tpu.pipeline_mode<synchronous>, transform_indices = @transform_8, window_bounds = array<i64: 1, 64>}, {pipeline_mode = #tpu.pipeline_mode<synchronous>, transform_indices = @transform_9, window_bounds = array<i64: 3, 4, 16>}, {pipeline_mode = #tpu.pipeline_mode<synchronous>, transform_indices = @transform_10, window_bounds = array<i64: 64, 24>}, {pipeline_mode = #tpu.pipeline_mode<synchronous>, transform_indices = @transform_11, window_bounds = array<i64: 3, 24, 32>}, {pipeline_mode = #tpu.pipeline_mode<synchronous>, transform_indices = @transform_12, window_bounds = array<i64: 1, 32>}, {pipeline_mode = #tpu.pipeline_mode<synchronous>, transform_indices = @transform_13, window_bounds = array<i64: 16, 8>}, {pipeline_mode = #tpu.pipeline_mode<synchronous>, transform_indices = @transform_14, window_bounds = array<i64: 64, 128>}, {pipeline_mode = #tpu.pipeline_mode<synchronous>, transform_indices = @transform_15, window_bounds = array<i64: 8, 4>}, {pipeline_mode = #tpu.pipeline_mode<synchronous>, transform_indices = @transform_16, window_bounds = array<i64: 32, 64>}, {transform_indices = @transform_17, window_bounds = array<i64: 1, 16, 128>}]} {
    %c0 = arith.constant 0 : index
    %c0_0 = arith.constant 0 : index
    %c0_1 = arith.constant 0 : index
    %0 = vector.load %arg1[%c0, %c0_0, %c0_1] : memref<1x16x64xf32, #tpu.memory_space<vmem>>, vector<1x16x64xf32>
    %1 = vector.shape_cast %0 : vector<1x16x64xf32> to vector<16x64xf32>
    %c0_2 = arith.constant 0 : index
    %c0_3 = arith.constant 0 : index
    %2 = vector.load %arg11[%c0_2, %c0_3] : memref<64x24xf32, #tpu.memory_space<vmem>>, vector<64x24xf32>
    %cst = arith.constant dense<0.000000e+00> : vector<16x24xf32>
    %3 = tpu.matmul %1, %2, %cst {dimension_numbers = #tpu.dot_dimension_numbers<[1], [0], [0], [1], [0, 0, 1, 1], [], []>} : vector<16x64xf32>, vector<64x24xf32>, vector<16x24xf32> -> vector<16x24xf32>
    %c0_4 = arith.constant 0 : index
    %c0_5 = arith.constant 0 : index
    %c0_6 = arith.constant 0 : index
    %4 = vector.load %arg10[%c0_4, %c0_5, %c0_6] : memref<3x4x16xf32, #tpu.memory_space<vmem>>, vector<1x4x16xf32>
    %5 = vector.shape_cast %4 : vector<1x4x16xf32> to vector<4x16xf32>
    %cst_7 = arith.constant dense<0.000000e+00> : vector<4x24xf32>
    %6 = tpu.matmul %5, %3, %cst_7 {dimension_numbers = #tpu.dot_dimension_numbers<[1], [0], [0], [1], [0, 0, 1, 1], [], []>} : vector<4x16xf32>, vector<16x24xf32>, vector<4x24xf32> -> vector<4x24xf32>
    %7 = arith.truncf %6 : vector<4x24xf32> to vector<4x24xbf16>
    %c0_8 = arith.constant 0 : index
    %c0_9 = arith.constant 0 : index
    %c0_10 = arith.constant 0 : index
    %8 = vector.load %arg12[%c0_8, %c0_9, %c0_10] : memref<3x24x32xbf16, #tpu.memory_space<vmem>>, vector<1x24x32xbf16>
    %9 = vector.shape_cast %8 : vector<1x24x32xbf16> to vector<24x32xbf16>
    %cst_11 = arith.constant dense<0.000000e+00> : vector<4x32xf32>
    %10 = tpu.matmul %7, %9, %cst_11 {dimension_numbers = #tpu.dot_dimension_numbers<[1], [0], [0], [1], [0, 0, 1, 1], [], []>} : vector<4x24xbf16>, vector<24x32xbf16>, vector<4x32xf32> -> vector<4x32xf32>
    %c1 = arith.constant 1 : index
    %c0_12 = arith.constant 0 : index
    %c0_13 = arith.constant 0 : index
    %11 = vector.load %arg10[%c1, %c0_12, %c0_13] : memref<3x4x16xf32, #tpu.memory_space<vmem>>, vector<1x4x16xf32>
    %12 = vector.shape_cast %11 : vector<1x4x16xf32> to vector<4x16xf32>
    %cst_14 = arith.constant dense<0.000000e+00> : vector<4x24xf32>
    %13 = tpu.matmul %12, %3, %cst_14 {dimension_numbers = #tpu.dot_dimension_numbers<[1], [0], [0], [1], [0, 0, 1, 1], [], []>} : vector<4x16xf32>, vector<16x24xf32>, vector<4x24xf32> -> vector<4x24xf32>
    %14 = arith.truncf %13 : vector<4x24xf32> to vector<4x24xbf16>
    %c1_15 = arith.constant 1 : index
    %c0_16 = arith.constant 0 : index
    %c0_17 = arith.constant 0 : index
    %15 = vector.load %arg12[%c1_15, %c0_16, %c0_17] : memref<3x24x32xbf16, #tpu.memory_space<vmem>>, vector<1x24x32xbf16>
    %16 = vector.shape_cast %15 : vector<1x24x32xbf16> to vector<24x32xbf16>
    %cst_18 = arith.constant dense<0.000000e+00> : vector<4x32xf32>
    %17 = tpu.matmul %14, %16, %cst_18 {dimension_numbers = #tpu.dot_dimension_numbers<[1], [0], [0], [1], [0, 0, 1, 1], [], []>} : vector<4x24xbf16>, vector<24x32xbf16>, vector<4x32xf32> -> vector<4x32xf32>
    %18 = arith.addf %10, %17 : vector<4x32xf32>
    %c2 = arith.constant 2 : index
    %c0_19 = arith.constant 0 : index
    %c0_20 = arith.constant 0 : index
    %19 = vector.load %arg10[%c2, %c0_19, %c0_20] : memref<3x4x16xf32, #tpu.memory_space<vmem>>, vector<1x4x16xf32>
    %20 = vector.shape_cast %19 : vector<1x4x16xf32> to vector<4x16xf32>
    %cst_21 = arith.constant dense<0.000000e+00> : vector<4x24xf32>
    %21 = tpu.matmul %20, %3, %cst_21 {dimension_numbers = #tpu.dot_dimension_numbers<[1], [0], [0], [1], [0, 0, 1, 1], [], []>} : vector<4x16xf32>, vector<16x24xf32>, vector<4x24xf32> -> vector<4x24xf32>
    %22 = arith.truncf %21 : vector<4x24xf32> to vector<4x24xbf16>
    %c2_22 = arith.constant 2 : index
    %c0_23 = arith.constant 0 : index
    %c0_24 = arith.constant 0 : index
    %23 = vector.load %arg12[%c2_22, %c0_23, %c0_24] : memref<3x24x32xbf16, #tpu.memory_space<vmem>>, vector<1x24x32xbf16>
    %24 = vector.shape_cast %23 : vector<1x24x32xbf16> to vector<24x32xbf16>
    %cst_25 = arith.constant dense<0.000000e+00> : vector<4x32xf32>
    %25 = tpu.matmul %22, %24, %cst_25 {dimension_numbers = #tpu.dot_dimension_numbers<[1], [0], [0], [1], [0, 0, 1, 1], [], []>} : vector<4x24xbf16>, vector<24x32xbf16>, vector<4x32xf32> -> vector<4x32xf32>
    %26 = arith.addf %18, %25 : vector<4x32xf32>
    %c0_26 = arith.constant 0 : index
    %c0_27 = arith.constant 0 : index
    %27 = vector.load %arg13[%c0_26, %c0_27] : memref<1x32xf32, #tpu.memory_space<vmem>>, vector<1x32xf32>
    %28 = vector.broadcast %27 : vector<1x32xf32> to vector<4x32xf32>
    %29 = arith.addf %26, %28 : vector<4x32xf32>
    %cst_28 = arith.constant 0.000000e+00 : f32
    %30 = vector.broadcast %cst_28 : f32 to vector<4x32xf32>
    %31 = arith.cmpf oge, %29, %30 : vector<4x32xf32>
    %cst_29 = arith.constant 5.000000e-02 : f32
    %32 = vector.broadcast %cst_29 : f32 to vector<4x32xf32>
    %33 = arith.mulf %32, %29 : vector<4x32xf32>
    %34 = arith.select %31, %29, %33 : vector<4x32xi1>, vector<4x32xf32>
    %c0_30 = arith.constant 0 : index
    %c0_31 = arith.constant 0 : index
    %35 = vector.load %arg16[%c0_30, %c0_31] : memref<8x4xf32, #tpu.memory_space<vmem>>, vector<8x4xf32>
    %cst_32 = arith.constant dense<0.000000e+00> : vector<8x32xf32>
    %36 = tpu.matmul %35, %34, %cst_32 {dimension_numbers = #tpu.dot_dimension_numbers<[1], [0], [0], [1], [0, 0, 1, 1], [], []>} : vector<8x4xf32>, vector<4x32xf32>, vector<8x32xf32> -> vector<8x32xf32>
    %c0_33 = arith.constant 0 : index
    %c0_34 = arith.constant 0 : index
    %37 = vector.load %arg17[%c0_33, %c0_34] : memref<32x64xf32, #tpu.memory_space<vmem>>, vector<32x64xf32>
    %cst_35 = arith.constant dense<0.000000e+00> : vector<8x64xf32>
    %38 = tpu.matmul %36, %37, %cst_35 {dimension_numbers = #tpu.dot_dimension_numbers<[1], [0], [0], [1], [0, 0, 1, 1], [], []>} : vector<8x32xf32>, vector<32x64xf32>, vector<8x64xf32> -> vector<8x64xf32>
    %c0_36 = arith.constant 0 : index
    %c0_37 = arith.constant 0 : index
    %39 = vector.load %arg7[%c0_36, %c0_37] : memref<64x40xf32, #tpu.memory_space<vmem>>, vector<64x40xf32>
    %cst_38 = arith.constant dense<0.000000e+00> : vector<16x40xf32>
    %40 = tpu.matmul %1, %39, %cst_38 {dimension_numbers = #tpu.dot_dimension_numbers<[1], [0], [0], [1], [0, 0, 1, 1], [], []>} : vector<16x64xf32>, vector<64x40xf32>, vector<16x40xf32> -> vector<16x40xf32>
    %c0_39 = arith.constant 0 : index
    %c0_40 = arith.constant 0 : index
    %c0_41 = arith.constant 0 : index
    %41 = vector.load %arg6[%c0_39, %c0_40, %c0_41] : memref<3x8x16xf32, #tpu.memory_space<vmem>>, vector<1x8x16xf32>
    %42 = vector.shape_cast %41 : vector<1x8x16xf32> to vector<8x16xf32>
    %cst_42 = arith.constant dense<0.000000e+00> : vector<8x40xf32>
    %43 = tpu.matmul %42, %40, %cst_42 {dimension_numbers = #tpu.dot_dimension_numbers<[1], [0], [0], [1], [0, 0, 1, 1], [], []>} : vector<8x16xf32>, vector<16x40xf32>, vector<8x40xf32> -> vector<8x40xf32>
    %44 = arith.truncf %43 : vector<8x40xf32> to vector<8x40xbf16>
    %c0_43 = arith.constant 0 : index
    %c0_44 = arith.constant 0 : index
    %c0_45 = arith.constant 0 : index
    %45 = vector.load %arg8[%c0_43, %c0_44, %c0_45] : memref<3x40x64xbf16, #tpu.memory_space<vmem>>, vector<1x40x64xbf16>
    %46 = vector.shape_cast %45 : vector<1x40x64xbf16> to vector<40x64xbf16>
    %cst_46 = arith.constant dense<0.000000e+00> : vector<8x64xf32>
    %47 = tpu.matmul %44, %46, %cst_46 {dimension_numbers = #tpu.dot_dimension_numbers<[1], [0], [0], [1], [0, 0, 1, 1], [], []>} : vector<8x40xbf16>, vector<40x64xbf16>, vector<8x64xf32> -> vector<8x64xf32>
    %c1_47 = arith.constant 1 : index
    %c0_48 = arith.constant 0 : index
    %c0_49 = arith.constant 0 : index
    %48 = vector.load %arg6[%c1_47, %c0_48, %c0_49] : memref<3x8x16xf32, #tpu.memory_space<vmem>>, vector<1x8x16xf32>
    %49 = vector.shape_cast %48 : vector<1x8x16xf32> to vector<8x16xf32>
    %cst_50 = arith.constant dense<0.000000e+00> : vector<8x40xf32>
    %50 = tpu.matmul %49, %40, %cst_50 {dimension_numbers = #tpu.dot_dimension_numbers<[1], [0], [0], [1], [0, 0, 1, 1], [], []>} : vector<8x16xf32>, vector<16x40xf32>, vector<8x40xf32> -> vector<8x40xf32>
    %51 = arith.truncf %50 : vector<8x40xf32> to vector<8x40xbf16>
    %c1_51 = arith.constant 1 : index
    %c0_52 = arith.constant 0 : index
    %c0_53 = arith.constant 0 : index
    %52 = vector.load %arg8[%c1_51, %c0_52, %c0_53] : memref<3x40x64xbf16, #tpu.memory_space<vmem>>, vector<1x40x64xbf16>
    %53 = vector.shape_cast %52 : vector<1x40x64xbf16> to vector<40x64xbf16>
    %cst_54 = arith.constant dense<0.000000e+00> : vector<8x64xf32>
    %54 = tpu.matmul %51, %53, %cst_54 {dimension_numbers = #tpu.dot_dimension_numbers<[1], [0], [0], [1], [0, 0, 1, 1], [], []>} : vector<8x40xbf16>, vector<40x64xbf16>, vector<8x64xf32> -> vector<8x64xf32>
    %55 = arith.addf %47, %54 : vector<8x64xf32>
    %c2_55 = arith.constant 2 : index
    %c0_56 = arith.constant 0 : index
    %c0_57 = arith.constant 0 : index
    %56 = vector.load %arg6[%c2_55, %c0_56, %c0_57] : memref<3x8x16xf32, #tpu.memory_space<vmem>>, vector<1x8x16xf32>
    %57 = vector.shape_cast %56 : vector<1x8x16xf32> to vector<8x16xf32>
    %cst_58 = arith.constant dense<0.000000e+00> : vector<8x40xf32>
    %58 = tpu.matmul %57, %40, %cst_58 {dimension_numbers = #tpu.dot_dimension_numbers<[1], [0], [0], [1], [0, 0, 1, 1], [], []>} : vector<8x16xf32>, vector<16x40xf32>, vector<8x40xf32> -> vector<8x40xf32>
    %59 = arith.truncf %58 : vector<8x40xf32> to vector<8x40xbf16>
    %c2_59 = arith.constant 2 : index
    %c0_60 = arith.constant 0 : index
    %c0_61 = arith.constant 0 : index
    %60 = vector.load %arg8[%c2_59, %c0_60, %c0_61] : memref<3x40x64xbf16, #tpu.memory_space<vmem>>, vector<1x40x64xbf16>
    %61 = vector.shape_cast %60 : vector<1x40x64xbf16> to vector<40x64xbf16>
    %cst_62 = arith.constant dense<0.000000e+00> : vector<8x64xf32>
    %62 = tpu.matmul %59, %61, %cst_62 {dimension_numbers = #tpu.dot_dimension_numbers<[1], [0], [0], [1], [0, 0, 1, 1], [], []>} : vector<8x40xbf16>, vector<40x64xbf16>, vector<8x64xf32> -> vector<8x64xf32>
    %63 = arith.addf %55, %62 : vector<8x64xf32>
    %c0_63 = arith.constant 0 : index
    %c0_64 = arith.constant 0 : index
    %64 = vector.load %arg9[%c0_63, %c0_64] : memref<1x64xf32, #tpu.memory_space<vmem>>, vector<1x64xf32>
    %65 = vector.broadcast %64 : vector<1x64xf32> to vector<8x64xf32>
    %66 = arith.addf %63, %65 : vector<8x64xf32>
    %cst_65 = arith.constant 0.000000e+00 : f32
    %67 = vector.broadcast %cst_65 : f32 to vector<8x64xf32>
    %68 = arith.cmpf oge, %66, %67 : vector<8x64xf32>
    %cst_66 = arith.constant 5.000000e-02 : f32
    %69 = vector.broadcast %cst_66 : f32 to vector<8x64xf32>
    %70 = arith.mulf %69, %66 : vector<8x64xf32>
    %71 = arith.select %68, %66, %70 : vector<8x64xi1>, vector<8x64xf32>
    %72 = arith.addf %38, %71 : vector<8x64xf32>
    %c0_67 = arith.constant 0 : index
    %c0_68 = arith.constant 0 : index
    %73 = vector.load %arg14[%c0_67, %c0_68] : memref<16x8xf32, #tpu.memory_space<vmem>>, vector<16x8xf32>
    %cst_69 = arith.constant dense<0.000000e+00> : vector<16x64xf32>
    %74 = tpu.matmul %73, %72, %cst_69 {dimension_numbers = #tpu.dot_dimension_numbers<[1], [0], [0], [1], [0, 0, 1, 1], [], []>} : vector<16x8xf32>, vector<8x64xf32>, vector<16x64xf32> -> vector<16x64xf32>
    %c0_70 = arith.constant 0 : index
    %c0_71 = arith.constant 0 : index
    %75 = vector.load %arg15[%c0_70, %c0_71] : memref<64x128xf32, #tpu.memory_space<vmem>>, vector<64x128xf32>
    %cst_72 = arith.constant dense<0.000000e+00> : vector<16x128xf32>
    %76 = tpu.matmul %74, %75, %cst_72 {dimension_numbers = #tpu.dot_dimension_numbers<[1], [0], [0], [1], [0, 0, 1, 1], [], []>} : vector<16x64xf32>, vector<64x128xf32>, vector<16x128xf32> -> vector<16x128xf32>
    %c0_73 = arith.constant 0 : index
    %c0_74 = arith.constant 0 : index
    %77 = vector.load %arg3[%c0_73, %c0_74] : memref<64x72xf32, #tpu.memory_space<vmem>>, vector<64x72xf32>
    %cst_75 = arith.constant dense<0.000000e+00> : vector<16x72xf32>
    %78 = tpu.matmul %1, %77, %cst_75 {dimension_numbers = #tpu.dot_dimension_numbers<[1], [0], [0], [1], [0, 0, 1, 1], [], []>} : vector<16x64xf32>, vector<64x72xf32>, vector<16x72xf32> -> vector<16x72xf32>
    %c0_76 = arith.constant 0 : index
    %c0_77 = arith.constant 0 : index
    %c0_78 = arith.constant 0 : index
    %79 = vector.load %arg2[%c0_76, %c0_77, %c0_78] : memref<3x16x16xf32, #tpu.memory_space<vmem>>, vector<1x16x16xf32>
    %80 = vector.shape_cast %79 : vector<1x16x16xf32> to vector<16x16xf32>
    %cst_79 = arith.constant dense<0.000000e+00> : vector<16x72xf32>
    %81 = tpu.matmul %80, %78, %cst_79 {dimension_numbers = #tpu.dot_dimension_numbers<[1], [0], [0], [1], [0, 0, 1, 1], [], []>} : vector<16x16xf32>, vector<16x72xf32>, vector<16x72xf32> -> vector<16x72xf32>
    %82 = arith.truncf %81 : vector<16x72xf32> to vector<16x72xbf16>
    %c0_80 = arith.constant 0 : index
    %c0_81 = arith.constant 0 : index
    %c0_82 = arith.constant 0 : index
    %83 = vector.load %arg4[%c0_80, %c0_81, %c0_82] : memref<3x72x128xbf16, #tpu.memory_space<vmem>>, vector<1x72x128xbf16>
    %84 = vector.shape_cast %83 : vector<1x72x128xbf16> to vector<72x128xbf16>
    %cst_83 = arith.constant dense<0.000000e+00> : vector<16x128xf32>
    %85 = tpu.matmul %82, %84, %cst_83 {dimension_numbers = #tpu.dot_dimension_numbers<[1], [0], [0], [1], [0, 0, 1, 1], [], []>} : vector<16x72xbf16>, vector<72x128xbf16>, vector<16x128xf32> -> vector<16x128xf32>
    %c1_84 = arith.constant 1 : index
    %c0_85 = arith.constant 0 : index
    %c0_86 = arith.constant 0 : index
    %86 = vector.load %arg2[%c1_84, %c0_85, %c0_86] : memref<3x16x16xf32, #tpu.memory_space<vmem>>, vector<1x16x16xf32>
    %87 = vector.shape_cast %86 : vector<1x16x16xf32> to vector<16x16xf32>
    %cst_87 = arith.constant dense<0.000000e+00> : vector<16x72xf32>
    %88 = tpu.matmul %87, %78, %cst_87 {dimension_numbers = #tpu.dot_dimension_numbers<[1], [0], [0], [1], [0, 0, 1, 1], [], []>} : vector<16x16xf32>, vector<16x72xf32>, vector<16x72xf32> -> vector<16x72xf32>
    %89 = arith.truncf %88 : vector<16x72xf32> to vector<16x72xbf16>
    %c1_88 = arith.constant 1 : index
    %c0_89 = arith.constant 0 : index
    %c0_90 = arith.constant 0 : index
    %90 = vector.load %arg4[%c1_88, %c0_89, %c0_90] : memref<3x72x128xbf16, #tpu.memory_space<vmem>>, vector<1x72x128xbf16>
    %91 = vector.shape_cast %90 : vector<1x72x128xbf16> to vector<72x128xbf16>
    %cst_91 = arith.constant dense<0.000000e+00> : vector<16x128xf32>
    %92 = tpu.matmul %89, %91, %cst_91 {dimension_numbers = #tpu.dot_dimension_numbers<[1], [0], [0], [1], [0, 0, 1, 1], [], []>} : vector<16x72xbf16>, vector<72x128xbf16>, vector<16x128xf32> -> vector<16x128xf32>
    %93 = arith.addf %85, %92 : vector<16x128xf32>
    %c2_92 = arith.constant 2 : index
    %c0_93 = arith.constant 0 : index
    %c0_94 = arith.constant 0 : index
    %94 = vector.load %arg2[%c2_92, %c0_93, %c0_94] : memref<3x16x16xf32, #tpu.memory_space<vmem>>, vector<1x16x16xf32>
    %95 = vector.shape_cast %94 : vector<1x16x16xf32> to vector<16x16xf32>
    %cst_95 = arith.constant dense<0.000000e+00> : vector<16x72xf32>
    %96 = tpu.matmul %95, %78, %cst_95 {dimension_numbers = #tpu.dot_dimension_numbers<[1], [0], [0], [1], [0, 0, 1, 1], [], []>} : vector<16x16xf32>, vector<16x72xf32>, vector<16x72xf32> -> vector<16x72xf32>
    %97 = arith.truncf %96 : vector<16x72xf32> to vector<16x72xbf16>
    %c2_96 = arith.constant 2 : index
    %c0_97 = arith.constant 0 : index
    %c0_98 = arith.constant 0 : index
    %98 = vector.load %arg4[%c2_96, %c0_97, %c0_98] : memref<3x72x128xbf16, #tpu.memory_space<vmem>>, vector<1x72x128xbf16>
    %99 = vector.shape_cast %98 : vector<1x72x128xbf16> to vector<72x128xbf16>
    %cst_99 = arith.constant dense<0.000000e+00> : vector<16x128xf32>
    %100 = tpu.matmul %97, %99, %cst_99 {dimension_numbers = #tpu.dot_dimension_numbers<[1], [0], [0], [1], [0, 0, 1, 1], [], []>} : vector<16x72xbf16>, vector<72x128xbf16>, vector<16x128xf32> -> vector<16x128xf32>
    %101 = arith.addf %93, %100 : vector<16x128xf32>
    %c0_100 = arith.constant 0 : index
    %c0_101 = arith.constant 0 : index
    %102 = vector.load %arg5[%c0_100, %c0_101] : memref<1x128xf32, #tpu.memory_space<vmem>>, vector<1x128xf32>
    %103 = vector.broadcast %102 : vector<1x128xf32> to vector<16x128xf32>
    %104 = arith.addf %101, %103 : vector<16x128xf32>
    %cst_102 = arith.constant 0.000000e+00 : f32
    %105 = vector.broadcast %cst_102 : f32 to vector<16x128xf32>
    %106 = arith.cmpf oge, %104, %105 : vector<16x128xf32>
    %cst_103 = arith.constant 5.000000e-02 : f32
    %107 = vector.broadcast %cst_103 : f32 to vector<16x128xf32>
    %108 = arith.mulf %107, %104 : vector<16x128xf32>
    %109 = arith.select %106, %104, %108 : vector<16x128xi1>, vector<16x128xf32>
    %110 = arith.addf %76, %109 : vector<16x128xf32>
    %cst_104 = arith.constant 0.333333343 : f32
    %111 = vector.broadcast %cst_104 : f32 to vector<16x128xf32>
    %112 = arith.mulf %110, %111 : vector<16x128xf32>
    %c0_105 = arith.constant 0 : index
    %c0_106 = arith.constant 0 : index
    %c0_107 = arith.constant 0 : index
    %113 = vector.load %arg18[%c0_105, %c0_106, %c0_107] : memref<1x16x128xf32, #tpu.memory_space<vmem>>, vector<1x16x128xf32>
    %114 = vector.shape_cast %113 : vector<1x16x128xf32> to vector<16x128xf32>
    %115 = vector.shape_cast %112 : vector<16x128xf32> to vector<1x16x128xf32>
    tpu.vector_store %arg18[%c0_105, %c0_106, %c0_107], %115 {strides = array<i32>} : memref<1x16x128xf32, #tpu.memory_space<vmem>>, vector<1x16x128xf32>,
    return
  }
  func.func @transform_0(%arg0: i32) -> (i32, i32, i32) {
    %c0_i32 = arith.constant 0 : i32
    %c0_i32_0 = arith.constant 0 : i32
    %c0_i32_1 = arith.constant 0 : i32
    return %arg0, %c0_i32, %c0_i32_0 : i32, i32, i32
  }
  func.func @transform_1(%arg0: i32) -> (i32, i32, i32) {
    %c0_i32 = arith.constant 0 : i32
    %c0_i32_0 = arith.constant 0 : i32
    %c0_i32_1 = arith.constant 0 : i32
    %c0_i32_2 = arith.constant 0 : i32
    return %c0_i32, %c0_i32_0, %c0_i32_1 : i32, i32, i32
  }
  func.func @transform_2(%arg0: i32) -> (i32, i32) {
    %c0_i32 = arith.constant 0 : i32
    %c0_i32_0 = arith.constant 0 : i32
    %c0_i32_1 = arith.constant 0 : i32
    return %c0_i32, %c0_i32_0 : i32, i32
  }
  func.func @transform_3(%arg0: i32) -> (i32, i32, i32) {
    %c0_i32 = arith.constant 0 : i32
    %c0_i32_0 = arith.constant 0 : i32
    %c0_i32_1 = arith.constant 0 : i32
    %c0_i32_2 = arith.constant 0 : i32
    return %c0_i32, %c0_i32_0, %c0_i32_1 : i32, i32, i32
  }
  func.func @transform_4(%arg0: i32) -> (i32, i32) {
    %c0_i32 = arith.constant 0 : i32
    %c0_i32_0 = arith.constant 0 : i32
    %c0_i32_1 = arith.constant 0 : i32
    return %c0_i32, %c0_i32_0 : i32, i32
  }
  func.func @transform_5(%arg0: i32) -> (i32, i32, i32) {
    %c0_i32 = arith.constant 0 : i32
    %c0_i32_0 = arith.constant 0 : i32
    %c0_i32_1 = arith.constant 0 : i32
    %c0_i32_2 = arith.constant 0 : i32
    return %c0_i32, %c0_i32_0, %c0_i32_1 : i32, i32, i32
  }
  func.func @transform_6(%arg0: i32) -> (i32, i32) {
    %c0_i32 = arith.constant 0 : i32
    %c0_i32_0 = arith.constant 0 : i32
    %c0_i32_1 = arith.constant 0 : i32
    return %c0_i32, %c0_i32_0 : i32, i32
  }
  func.func @transform_7(%arg0: i32) -> (i32, i32, i32) {
    %c0_i32 = arith.constant 0 : i32
    %c0_i32_0 = arith.constant 0 : i32
    %c0_i32_1 = arith.constant 0 : i32
    %c0_i32_2 = arith.constant 0 : i32
    return %c0_i32, %c0_i32_0, %c0_i32_1 : i32, i32, i32
  }
  func.func @transform_8(%arg0: i32) -> (i32, i32) {
    %c0_i32 = arith.constant 0 : i32
    %c0_i32_0 = arith.constant 0 : i32
    %c0_i32_1 = arith.constant 0 : i32
    return %c0_i32, %c0_i32_0 : i32, i32
  }
  func.func @transform_9(%arg0: i32) -> (i32, i32, i32) {
    %c0_i32 = arith.constant 0 : i32
    %c0_i32_0 = arith.constant 0 : i32
    %c0_i32_1 = arith.constant 0 : i32
    %c0_i32_2 = arith.constant 0 : i32
    return %c0_i32, %c0_i32_0, %c0_i32_1 : i32, i32, i32
  }
  func.func @transform_10(%arg0: i32) -> (i32, i32) {
    %c0_i32 = arith.constant 0 : i32
    %c0_i32_0 = arith.constant 0 : i32
    %c0_i32_1 = arith.constant 0 : i32
    return %c0_i32, %c0_i32_0 : i32, i32
  }
  func.func @transform_11(%arg0: i32) -> (i32, i32, i32) {
    %c0_i32 = arith.constant 0 : i32
    %c0_i32_0 = arith.constant 0 : i32
    %c0_i32_1 = arith.constant 0 : i32
    %c0_i32_2 = arith.constant 0 : i32
    return %c0_i32, %c0_i32_0, %c0_i32_1 : i32, i32, i32
  }
  func.func @transform_12(%arg0: i32) -> (i32, i32) {
    %c0_i32 = arith.constant 0 : i32
    %c0_i32_0 = arith.constant 0 : i32
    %c0_i32_1 = arith.constant 0 : i32
    return %c0_i32, %c0_i32_0 : i32, i32
  }
  func.func @transform_13(%arg0: i32) -> (i32, i32) {
    %c0_i32 = arith.constant 0 : i32
    %c0_i32_0 = arith.constant 0 : i32
    %c0_i32_1 = arith.constant 0 : i32
    return %c0_i32, %c0_i32_0 : i32, i32
  }
  func.func @transform_14(%arg0: i32) -> (i32, i32) {
    %c0_i32 = arith.constant 0 : i32
    %c0_i32_0 = arith.constant 0 : i32
    %c0_i32_1 = arith.constant 0 : i32
    return %c0_i32, %c0_i32_0 : i32, i32
  }
  func.func @transform_15(%arg0: i32) -> (i32, i32) {
    %c0_i32 = arith.constant 0 : i32
    %c0_i32_0 = arith.constant 0 : i32
    %c0_i32_1 = arith.constant 0 : i32
    return %c0_i32, %c0_i32_0 : i32, i32
  }
  func.func @transform_16(%arg0: i32) -> (i32, i32) {
    %c0_i32 = arith.constant 0 : i32
    %c0_i32_0 = arith.constant 0 : i32
    %c0_i32_1 = arith.constant 0 : i32
    return %c0_i32, %c0_i32_0 : i32, i32
  }
  func.func @transform_17(%arg0: i32) -> (i32, i32, i32) {
    %c0_i32 = arith.constant 0 : i32
    %c0_i32_0 = arith.constant 0 : i32
    %c0_i32_1 = arith.constant 0 : i32
    return %arg0, %c0_i32, %c0_i32_0 : i32, i32, i32
  }
}

</mosaic_0001>

<bundles_post_ra>
// kernel: tile.18
= control target key start
LH: loop header
LB: loop body
LE: loop exit
PB: predicated region body
PF: predicated region fallthrough
CT: control target
= control target key end

     0   :  { %s28_s0 = inlined_call_operand.vmem [shape: f32[8], index: 0, kind: input, shape index: {}]   ;;  %s29_s1 = inlined_call_operand.vmem [shape: f32[16,8], index: 1, kind: output, shape index: {}]  }
   0x1   :  { %v4_v0 = vld [vmem:[%s28_s0] ss:$0 sm:$0xff] }
   0x2   :  { %5 = vst [vmem:[%s29_s1] sm:$0xff] %v4_v0 }
   0x3   :  { %8 = vst [vmem:[%s29_s1 + $0x8] sm:$0xff] %v4_v0 }

// kernel: tile.19
= control target key start
LH: loop header
LB: loop body
LE: loop exit
PB: predicated region body
PF: predicated region fallthrough
CT: control target
= control target key end

     0   :  { %s131_s10 = smov 120   ;;  %s132_s11 = smov 104   ;;  %vm3_vm0 = vcmask 64512   ;;  %vm9_vm1 = vcmask 1048512   ;;  %vm15_vm2 = vcmask 982912   ;;  %vm21_vm3 = vcmask 917312   ;;  %s207_s0 = inlined_call_operand.vmem [shape: f32[16,8], index: 0, kind: input, shape index: {}]   ;;  %s208_s1 = inlined_call_operand.vmem [shape: f32[1,128], index: 1, kind: output, shape index: {}]  }
   0x1   :  { %v101_v0 = vld [vmem:[%s207_s0 + $0xf] sm:$0x1]   ;;  %v103_v1 = vld [vmem:[%s207_s0 + $0xd] sm:$0x1]   ;;  %v105_v2 = vld [vmem:[%s207_s0 + $0xb] sm:$0x1]  }
   0x2   :  { %7 = vrot.lane.b32.xlu0 %v101_v0, %s131_s10  ;;  %19 = vrot.lane.b32.xlu1 %v103_v1, %s132_s11  ;;  %s133_s14 = smov 88   ;;  %v102_v3 = vld [vmem:[%s207_s0 + $0xe] sm:$0x1]   ;;  %v104_v4 = vld [vmem:[%s207_s0 + $0xc] sm:$0x1]   ;;  %s134_s19 = smov 112  }
   0x3   :  { %31 = vrot.lane.b32.xlu2 %v105_v2, %s133_s14  ;;  %s135_s20 = smov 96   ;;  %v106_v5 = vld [vmem:[%s207_s0 + $0xa] sm:$0x1]   ;;  %s136_s23 = smov 80   ;;  %v107_v6 = vld [vmem:[%s207_s0 + $0x9] sm:$0x1]  }
   0x4   :  { %v108_v7 = vld [vmem:[%s207_s0 + $0x8] sm:$0x1]   ;;  %s137_s28 = smov 72   ;;  %s138_s29 = smov 64   ;;  %v109_v8 = vld [vmem:[%s207_s0 + $0x7] sm:$0x1]  }
   0x5   :  { %s139_s3 = smov 56   ;;  %v110_v9 = vld [vmem:[%s207_s0 + $0x6] sm:$0x1]   ;;  %v111_v10 = vld [vmem:[%s207_s0 + $0x5] sm:$0x1]   ;;  %s140_s8 = smov 48  }
   0x6   :  { %s141_s9 = smov 40   ;;  %v112_v11 = vld [vmem:[%s207_s0 + $0x4] sm:$0x1]   ;;  %s142_s12 = smov 32   ;;  %v113_v12 = vld [vmem:[%s207_s0 + $0x3] sm:$0x1]  }
   0x7   :  { %v114_v13 = vld [vmem:[%s207_s0 + $0x2] sm:$0x1]   ;;  %s143_s17 = smov 24   ;;  %s144_s18 = smov 16   ;;  %v115_v14 = vld [vmem:[%s207_s0 + $0x1] sm:$0x1]  }
   0x8   :  { %s145_s21 = smov 8   ;;  %v2_v15 = vld [vmem:[%s207_s0] sm:$0x1]   ;;  %vm27_vm4 = vcmask 851712   ;;  %vm33_vm5 = vcmask 786112   ;;  %vm39_vm6 = vcmask 720512  }
   0x9   :  { %4 = vst.msk [vmem:[#allocation0] sm:$0x1] %vm3_vm0, %v2_v15   ;;  %vm45_vm7 = vcmask 654912   ;;  %vm51_vm8 = vcmask 589312   ;;  %vm57_vm9 = vcmask 523712   ;;  %vm63_vm10 = vcmask 458112  }
   0xa   :  { %13 = vrot.lane.b32.xlu0 %v102_v3, %s134_s19  ;;  %25 = vrot.lane.b32.xlu1 %v104_v4, %s135_s20  ;;  %vm69_vm11 = vcmask 392512   ;;  %vm75_vm12 = vcmask 326912   ;;  %vm81_vm13 = vcmask 261312   ;;  %vm87_vm14 = vcmask 195712  }
   0xb   :  { %37 = vrot.lane.b32.xlu2 %v106_v5, %s136_s23  ;;  %vm93_vm15 = vcmask 130112  }
  0x12   :  { %43 = vrot.lane.b32.xlu0 %v107_v6, %s137_s28  ;;  %49 = vrot.lane.b32.xlu1 %v108_v7, %s138_s29 }
  0x13   :  { %55 = vrot.lane.b32.xlu2 %v109_v8, %s139_s3 }
  0x1a   :  { %61 = vrot.lane.b32.xlu0 %v110_v9, %s140_s8  ;;  %67 = vrot.lane.b32.xlu1 %v111_v10, %s141_s9 }
  0x1b   :  { %73 = vrot.lane.b32.xlu2 %v112_v11, %s142_s12 }
  0x22   :  { %79 = vrot.lane.b32.xlu0 %v113_v12, %s143_s17  ;;  %85 = vrot.lane.b32.xlu1 %v114_v13, %s144_s18 }
  0x23   :  { %91 = vrot.lane.b32.xlu2 %v115_v14, %s145_s21 }
  0x5d   :  { %v32_v16 = vpop.permute.xlu2 %31  }
  0x65   :  { %v38_v17 = vpop.permute.xlu2 %37  }
  0x6d   :  { %v56_v18 = vpop.permute.xlu2 %55  }
  0x74   :  { %v8_v19 = vpop.permute.xlu0 %7   ;;  %v20_v20 = vpop.permute.xlu1 %19  }
  0x75   :  { %10 = vst.msk [vmem:[#allocation0] sm:$0x1] %vm9_vm1, %v8_v19   ;;  %v74_v21 = vpop.permute.xlu2 %73  }
  0x7c   :  { %v14_v22 = vpop.permute.xlu0 %13   ;;  %v26_v23 = vpop.permute.xlu1 %25  }
  0x7d   :  { %16 = vst.msk [vmem:[#allocation0] sm:$0x1] %vm15_vm2, %v14_v22   ;;  %v92_v24 = vpop.permute.xlu2 %91  }
  0x7e   :  { %22 = vst.msk [vmem:[#allocation0] sm:$0x1] %vm21_vm3, %v20_v20  }
  0x7f   :  { %28 = vst.msk [vmem:[#allocation0] sm:$0x1] %vm27_vm4, %v26_v23  }
  0x80   :  { %34 = vst.msk [vmem:[#allocation0] sm:$0x1] %vm33_vm5, %v32_v16  }
  0x81   :  { %40 = vst.msk [vmem:[#allocation0] sm:$0x1] %vm39_vm6, %v38_v17  }
  0x84   :  { %v44_v25 = vpop.permute.xlu0 %43   ;;  %v50_v26 = vpop.permute.xlu1 %49  }
  0x85   :  { %46 = vst.msk [vmem:[#allocation0] sm:$0x1] %vm45_vm7, %v44_v25  }
  0x86   :  { %52 = vst.msk [vmem:[#allocation0] sm:$0x1] %vm51_vm8, %v50_v26  }
  0x87   :  { %58 = vst.msk [vmem:[#allocation0] sm:$0x1] %vm57_vm9, %v56_v18  }
  0x8c   :  { %v62_v27 = vpop.permute.xlu0 %61   ;;  %v68_v28 = vpop.permute.xlu1 %67  }
  0x8d   :  { %64 = vst.msk [vmem:[#allocation0] sm:$0x1] %vm63_vm10, %v62_v27  }
  0x8e   :  { %70 = vst.msk [vmem:[#allocation0] sm:$0x1] %vm69_vm11, %v68_v28  }
  0x8f   :  { %76 = vst.msk [vmem:[#allocation0] sm:$0x1] %vm75_vm12, %v74_v21  }
  0x94   :  { %v80_v29 = vpop.permute.xlu0 %79   ;;  %v86_v30 = vpop.permute.xlu1 %85  }
  0x95   :  { %82 = vst.msk [vmem:[#allocation0] sm:$0x1] %vm81_vm13, %v80_v29  }
  0x96   :  { %88 = vst.msk [vmem:[#allocation0] sm:$0x1] %vm87_vm14, %v86_v30  }
  0x97   :  { %94 = vst.msk [vmem:[#allocation0] sm:$0x1] %vm93_vm15, %v92_v24  }
  0x9e   :  { %v97_v31 = vld [vmem:[#allocation0] sm:$0x1] }
  0x9f   :  { %100 = vst [vmem:[%s208_s1] sm:$0x1] %v97_v31 }

// kernel: tile.23
= control target key start
LH: loop header
LB: loop body
LE: loop exit
PB: predicated region body
PF: predicated region fallthrough
CT: control target
= control target key end

     0   :  { %s22_s0 = inlined_call_operand.vmem [shape: f32[8], index: 0, kind: input, shape index: {}]   ;;  %s23_s1 = inlined_call_operand.vmem [shape: f32[8,8], index: 1, kind: output, shape index: {}]  }
   0x1   :  { %v4_v0 = vld [vmem:[%s22_s0] ss:$0 sm:$0xff] }
   0x2   :  { %5 = vst [vmem:[%s23_s1] sm:$0xff] %v4_v0 }

// kernel: tile.24
= control target key start
LH: loop header
LB: loop body
LE: loop exit
PB: predicated region body
PF: predicated region fallthrough
CT: control target
= control target key end

     0   :  { %s67_s10 = smov 56   ;;  %s68_s11 = smov 40   ;;  %vm3_vm0 = vcmask 64512   ;;  %vm9_vm1 = vcmask 523712   ;;  %vm15_vm2 = vcmask 458112   ;;  %vm21_vm3 = vcmask 392512   ;;  %s111_s0 = inlined_call_operand.vmem [shape: f32[8,8], index: 0, kind: input, shape index: {}]   ;;  %s112_s1 = inlined_call_operand.vmem [shape: f32[1,64], index: 1, kind: output, shape index: {}]  }
   0x1   :  { %v53_v0 = vld [vmem:[%s111_s0 + $0x7] sm:$0x1]   ;;  %v55_v1 = vld [vmem:[%s111_s0 + $0x5] sm:$0x1]   ;;  %v57_v2 = vld [vmem:[%s111_s0 + $0x3] sm:$0x1]  }
   0x2   :  { %7 = vrot.lane.b32.xlu0 %v53_v0, %s67_s10  ;;  %19 = vrot.lane.b32.xlu1 %v55_v1, %s68_s11  ;;  %s69_s14 = smov 24   ;;  %v54_v3 = vld [vmem:[%s111_s0 + $0x6] sm:$0x1]   ;;  %v56_v4 = vld [vmem:[%s111_s0 + $0x4] sm:$0x1]   ;;  %s70_s21 = smov 48  }
   0x3   :  { %31 = vrot.lane.b32.xlu2 %v57_v2, %s69_s14  ;;  %v58_v5 = vld [vmem:[%s111_s0 + $0x2] sm:$0x1]   ;;  %s71_s22 = smov 32   ;;  %s72_s23 = smov 16   ;;  %v59_v6 = vld [vmem:[%s111_s0 + $0x1] sm:$0x1]  }
   0x4   :  { %s73_s26 = smov 8   ;;  %v2_v7 = vld [vmem:[%s111_s0] sm:$0x1]   ;;  %vm27_vm4 = vcmask 326912   ;;  %vm33_vm5 = vcmask 261312   ;;  %vm39_vm6 = vcmask 195712  }
   0x5   :  { %4 = vst.msk [vmem:[#allocation0] sm:$0x1] %vm3_vm0, %v2_v7   ;;  %vm45_vm7 = vcmask 130112  }
   0xa   :  { %13 = vrot.lane.b32.xlu0 %v54_v3, %s70_s21  ;;  %25 = vrot.lane.b32.xlu1 %v56_v4, %s71_s22 }
   0xb   :  { %37 = vrot.lane.b32.xlu2 %v58_v5, %s72_s23 }
  0x12   :  { %43 = vrot.lane.b32.xlu0 %v59_v6, %s73_s26 }
  0x5d   :  { %v32_v8 = vpop.permute.xlu2 %31  }
  0x65   :  { %v38_v9 = vpop.permute.xlu2 %37  }
  0x74   :  { %v8_v10 = vpop.permute.xlu0 %7   ;;  %v20_v11 = vpop.permute.xlu1 %19  }
  0x75   :  { %10 = vst.msk [vmem:[#allocation0] sm:$0x1] %vm9_vm1, %v8_v10  }
  0x7c   :  { %v14_v12 = vpop.permute.xlu0 %13   ;;  %v26_v13 = vpop.permute.xlu1 %25  }
  0x7d   :  { %16 = vst.msk [vmem:[#allocation0] sm:$0x1] %vm15_vm2, %v14_v12  }
  0x7e   :  { %22 = vst.msk [vmem:[#allocation0] sm:$0x1] %vm21_vm3, %v20_v11  }
  0x7f   :  { %28 = vst.msk [vmem:[#allocation0] sm:$0x1] %vm27_vm4, %v26_v13  }
  0x80   :  { %34 = vst.msk [vmem:[#allocation0] sm:$0x1] %vm33_vm5, %v32_v8  }
  0x81   :  { %40 = vst.msk [vmem:[#allocation0] sm:$0x1] %vm39_vm6, %v38_v9  }
  0x84   :  { %v44_v14 = vpop.permute.xlu0 %43  }
  0x85   :  { %46 = vst.msk [vmem:[#allocation0] sm:$0x1] %vm45_vm7, %v44_v14  }
  0x8c   :  { %v49_v15 = vld [vmem:[#allocation0] sm:$0x1] }
  0x8d   :  { %52 = vst [vmem:[%s112_s1] sm:$0x1] %v49_v15 }

// kernel: tile.28
= control target key start
LH: loop header
LB: loop body
LE: loop exit
PB: predicated region body
PF: predicated region fallthrough
CT: control target
= control target key end

     0   :  { %s22_s0 = inlined_call_operand.vmem [shape: f32[8], index: 0, kind: input, shape index: {}]   ;;  %s23_s1 = inlined_call_operand.vmem [shape: f32[4,8], index: 1, kind: output, shape index: {}]  }
   0x1   :  { %v4_v0 = vld [vmem:[%s22_s0] ss:$0 sm:$0xff] }
   0x2   :  { %5 = vst [vmem:[%s23_s1] sm:$0xf] %v4_v0 }

// kernel: tile.29
= control target key start
LH: loop header
LB: loop body
LE: loop exit
PB: predicated region body
PF: predicated region fallthrough
CT: control target
= control target key end

     0   :  { %s37_s8 = smov 8   ;;  %s38_s9 = smov 16   ;;  %vm7_vm0 = vcmask 64512   ;;  %vm13_vm1 = vcmask 261312   ;;  %vm19_vm2 = vcmask 195712   ;;  %vm25_vm3 = vcmask 130112   ;;  %s55_s0 = inlined_call_operand.vmem [shape: f32[4,8], index: 0, kind: input, shape index: {}]   ;;  %s56_s1 = inlined_call_operand.vmem [shape: f32[1,32], index: 1, kind: output, shape index: {}]  }
   0x1   :  { %v4_v0 = vld [vmem:[%s55_s0] sm:$0xf]  ;;  %s36_s0 = smov 24  }
   0x2   :  { %5 = vst [vmem:[#allocation1] sm:$0xf] %v4_v0 }
   0x9   :  { %v10_v1 = vld [vmem:[#allocation1 + $0x3] sm:$0x1]   ;;  %v22_v2 = vld [vmem:[#allocation1 + $0x1] sm:$0x1]   ;;  %v16_v3 = vld [vmem:[#allocation1 + $0x2] sm:$0x1]  }
   0xa   :  { %11 = vrot.lane.b32.xlu0 %v10_v1, %s36_s0  ;;  %23 = vrot.lane.b32.xlu1 %v22_v2, %s37_s8  ;;  %v6_v4 = vld [vmem:[#allocation1] sm:$0x1]  }
   0xb   :  { %8 = vst.msk [vmem:[#allocation0] sm:$0x1] %vm7_vm0, %v6_v4  }
  0x12   :  { %17 = vrot.lane.b32.xlu0 %v16_v3, %s38_s9 }
  0x7c   :  { %v12_v5 = vpop.permute.xlu0 %11   ;;  %v24_v6 = vpop.permute.xlu1 %23  }
  0x7d   :  { %14 = vst.msk [vmem:[#allocation0] sm:$0x1] %vm13_vm1, %v12_v5  }
  0x84   :  { %v18_v7 = vpop.permute.xlu0 %17  }
  0x85   :  { %20 = vst.msk [vmem:[#allocation0] sm:$0x1] %vm19_vm2, %v18_v7  }
  0x86   :  { %26 = vst.msk [vmem:[#allocation0] sm:$0x1] %vm25_vm3, %v24_v6  }
  0x8d   :  { %v29_v8 = vld [vmem:[#allocation0] sm:$0x1] }
  0x8e   :  { %32 = vst [vmem:[%s56_s1] sm:$0x1] %v29_v8 }

// kernel: multi_scale_convolution.1
= control target key start
LH: loop header
LB: loop body
LE: loop exit
PB: predicated region body
PF: predicated region fallthrough
CT: control target
= control target key end

     0   :  { %s1812_s24 = smov 0   ;;  %s2130_s0 = inlined_call_operand.vmem [shape: f32[2,16,64], index: 0, kind: input, shape index: {}]   ;;  %s2131_s1 = inlined_call_operand.vmem [shape: f32[3,16,16], index: 1, kind: input, shape index: {}]   ;;  %s2132_s2 = inlined_call_operand.vmem [shape: f32[64,72], index: 2, kind: input, shape index: {}]   ;;  %s2133_s3 = inlined_call_operand.vmem [shape: bf16[3,72,128], index: 3, kind: input, shape index: {}]   ;;  %s2134_s4 = inlined_call_operand.vmem [shape: f32[1,128], index: 4, kind: input, shape index: {}]   ;;  %s2135_s5 = inlined_call_operand.vmem [shape: f32[3,8,16], index: 5, kind: input, shape index: {}]   ;;  %s2136_s6 = inlined_call_operand.vmem [shape: f32[64,40], index: 6, kind: input, shape index: {}]   ;;  %s2137_s7 = inlined_call_operand.vmem [shape: bf16[3,40,64], index: 7, kind: input, shape index: {}]   ;;  %s2138_s8 = inlined_call_operand.vmem [shape: f32[1,64], index: 8, kind: input, shape index: {}]   ;;  %s2139_s9 = inlined_call_operand.vmem [shape: f32[3,4,16], index: 9, kind: input, shape index: {}]   ;;  %s2140_s10 = inlined_call_operand.vmem [shape: f32[64,24], index: 10, kind: input, shape index: {}]   ;;  %s2141_s11 = inlined_call_operand.vmem [shape: bf16[3,24,32], index: 11, kind: input, shape index: {}]   ;;  %s2142_s12 = inlined_call_operand.vmem [shape: f32[1,32], index: 12, kind: input, shape index: {}]   ;;  %s2143_s13 = inlined_call_operand.vmem [shape: f32[16,8], index: 13, kind: input, shape index: {}]   ;;  %s2144_s14 = inlined_call_operand.vmem [shape: f32[64,128], index: 14, kind: input, shape index: {}]   ;;  %s2145_s15 = inlined_call_operand.vmem [shape: f32[8,4], index: 15, kind: input, shape index: {}]   ;;  %s2146_s16 = inlined_call_operand.vmem [shape: f32[32,64], index: 16, kind: input, shape index: {}]   ;;  %s2147_s17 = inlined_call_operand.vmem [shape: f32[2,16,128], index: 17, kind: output, shape index: {}]  }
   0x1   :  { %2149 = sst [smem:[#allocation2_spill]] %s2130_s0 }
   0x2   :  { %2150 = sst [smem:[#allocation3_spill]] %s2131_s1 }
   0x3 LB: > { %s1509_s25 = sadd.s32 4294967295, %s1720_s24   ;;  %p1513_p0 = scmp.ge.s32.totalorder %s1720_s24, 1  ;;  %s1720_s24 = sphi %s1812_s24, %s27_s24  }
   0x4   : > { %p487_p1 = scmp.lt.s32.totalorder %s1720_s24, 3 }
   0x6   : > { %p488_p2 = pnand %p1513_p0, %p487_p1 }
   0x7   : > { %p539_p3 = scmp.lt.s32.totalorder (!%p488_p2), %s1509_s25, 1  ;;  %s2151_s0 = sld [smem:[#allocation2_spill]] (!%p488_p2) }
   0x8   : > { %491 = sbr.rel (%p488_p2) target bundleno = 1026 (0x402), region = 88  ;;  %s2152_s18 = sld [smem:[#allocation3_spill]] (!%p488_p2) }
   0xd   : > { %v559_v0 = vld [vmem:[%s2140_s10 + $0x38] sm:$0xff]  ;;  %v558_v1 = vld [vmem:[%s2140_s10 + $0x30] sm:$0xff]  ;;  %v557_v2 = vld [vmem:[%s2140_s10 + $0x28] sm:$0xff]  ;;  %s2154_s25 = smov (!%p539_p3, %s1509_s25), 1  ;;  %vm560_vm0 = vcmask 523264   ;;  %vm662_vm1 = vcmask 1043456  }
   0xe   : > { %575 = vmatpush.msra.mxu0 %v559_v0  ;;  %v556_v3 = vld [vmem:[%s2140_s10 + $0x20] sm:$0xff]  ;;  %v555_v4 = vld [vmem:[%s2140_s10 + $0x18] sm:$0xff]  ;;  %s1680_s21 = sshll.u32 %s2154_s25, 4  ;;  %v554_v5 = vld [vmem:[%s2140_s10 + $0x10] sm:$0xff]  ;;  %vm591_vm2 = vcmask 130048   ;;  %vm658_vm3 = vcmask 195584  }
   0xf   : > { %v553_v6 = vld [vmem:[%s2140_s10 + $0x8] sm:$0xff]  ;;  %s543_s30 = scalar_lea.vmem %s2151_s0, %s1680_s21  ;;  %v552_v7 = vld [vmem:[%s2140_s10] sm:$0xff]  ;;  %v1525_v19 = vld [vmem:[%s2141_s11 + $0x14] sm:$0xf]  ;;  %vm775_vm5 = vcmask 31744   ;;  %vm914_vm6 = vcmask 326656   ;;  %s548_s26 = scalar_lea.vmem %s2147_s17, %s1680_s21 }
  0x10   : > { %576 = vmatpush.msra.mxu0 %v558_v1  ;;  %v1852_v8 = vld [vmem:[%s543_s30] sm:$0xff]  ;;  %v1856_v9 = vld [vmem:[%s543_s30 + $0x8] sm:$0xff]  ;;  %v654_v20 = vunpack.c.l.b16 %v1525_v19  ;;  %v813_v27 = vld [vmem:[%s2136_s6 + $0x38] sm:$0xff]  ;;  %vm1043_vm7 = vcmask 261120   ;;  %vm1069_vm9 = vcmask 64512   ;;  %vm1249_vm10 = vcmask 588800  }
  0x11   : > { %v618_v11 = vld [vmem:[%s2141_s11 + $0x8] sm:$0xf]  ;;  %v590_v15 = vld [vmem:[%s2139_s9] sm:$0xf]  ;;  %v1521_v16 = vld [vmem:[%s2139_s9 + $0x4] sm:$0xf] }
  0x12   : > { %577 = vmatpush.msra.mxu0 %v557_v2  ;;  %v684_v12 = vunpack.c.l.b16 %v618_v11  ;;  %v1536_v17 = vld [vmem:[%s2139_s9 + $0x8] sm:$0xf]  ;;  %v1682_v21 = vld [vmem:[%s2141_s11] sm:$0xff]  ;;  %v656_v23 = vpack.c.b16 %v654_v20, %v654_v20  ;;  %v1683_v29 = vld [vmem:[%s2141_s11 + $0xc] sm:$0xff] }
  0x13   : > { %v1540_v22 = vld [vmem:[%s2141_s11 + $0x20] sm:$0xf]  ;;  %v812_v30 = vld [vmem:[%s2136_s6 + $0x30] sm:$0xff]  ;;  %v1684_v31 = vld [vmem:[%s2141_s11 + $0x18] sm:$0xff] }
  0x14   : > { %578 = vmatpush.msra.mxu0 %v556_v3  ;;  %v686_v13 = vpack.c.b16 %v684_v12, %v684_v12  ;;  %v742_v24 = vunpack.c.l.b16 %v1540_v22  ;;  %v664_v25 = vsel %vm662_vm1, %v656_v23, 0  ;;  %v811_v32 = vld [vmem:[%s2136_s6 + $0x28] sm:$0xff]  ;;  %v810_v33 = vld [vmem:[%s2136_s6 + $0x20] sm:$0xff]  ;;  %v809_v34 = vld [vmem:[%s2136_s6 + $0x18] sm:$0xff] }
  0x15   : > { %v808_v35 = vld [vmem:[%s2136_s6 + $0x10] sm:$0xff]  ;;  %v807_v36 = vld [vmem:[%s2136_s6 + $0x8] sm:$0xff]  ;;  %v806_v37 = vld [vmem:[%s2136_s6] sm:$0xff] }
  0x16   : > { %579 = vmatpush.msra.mxu0 %v555_v4  ;;  %v692_v18 = vsel %vm662_vm1, %v686_v13, 0  ;;  %v744_v26 = vpack.c.b16 %v742_v24, %v742_v24  ;;  %v1711_v49 = vld [vmem:[%s2142_s12] ss:$0 sm:$0xff]  ;;  %v866_v50 = vld [vmem:[%s2137_s7 + $0x10] sm:$0xf]  ;;  %v1551_v0 = vld [vmem:[%s2135_s5 + $0x8] sm:$0xff] }
  0x17   : > { %v943_v54 = vunpack.c.l.b16 %v866_v50  ;;  %v774_v56 = vld [vmem:[%s2145_s15] sm:$0xff]  ;;  %v1686_v1 = vld [vmem:[%s2137_s7 + $0x8] sm:$0xff]  ;;  %v1576_v2 = vld [vmem:[%s2135_s5 + $0x10] sm:$0xff] }
  0x18   : > { %580 = vmatpush.msra.mxu0 %v554_v5  ;;  %v750_v28 = vsel %vm662_vm1, %v744_v26, 0  ;;  %v837_v62 = vld [vmem:[%s2135_s5] sm:$0xff]  ;;  %v1113_v12 = vld [vmem:[%s2132_s2 + $0x30] sm:$0xff]  ;;  %v1582_v13 = vld [vmem:[%s2137_s7 + $0x38] sm:$0xf] }
  0x19   : > { %v946_v60 = vpack.c.b16 %v943_v54, %v943_v54  ;;  %v1557_v3 = vld [vmem:[%s2137_s7 + $0x24] sm:$0xf]  ;;  %v1688_v11 = vld [vmem:[%s2137_s7 + $0x1c] sm:$0xff]  ;;  %v1109_v23 = vld [vmem:[%s2132_s2 + $0x10] sm:$0xff] }
  0x1a   : > { %581 = vmatpush.msra.mxu0 %v553_v6  ;;  %v908_v4 = vunpack.c.l.b16 %v1557_v3  ;;  %v1685_v5 = vld [vmem:[%s2137_s7] sm:$0xff]  ;;  %v1110_v20 = vld [vmem:[%s2132_s2 + $0x18] sm:$0xff]  ;;  %v804_v24 = vld [vmem:[%s2146_s16 + $0x10] sm:$0xff] }
  0x1b   : > { %v953_v63 = vsel %vm662_vm1, %v946_v60, 0  ;;  %v1111_v19 = vld [vmem:[%s2132_s2 + $0x20] sm:$0xff]  ;;  %v805_v22 = vld [vmem:[%s2146_s16 + $0x18] sm:$0xff]  ;;  %v1689_v26 = vld [vmem:[%s2137_s7 + $0x28] sm:$0xff] }
  0x1c   : > { %582 = vmatpush.msra.mxu0 %v552_v7  ;;  %v911_v6 = vpack.c.b16 %v908_v4, %v908_v4  ;;  %v1067_v60 = vld [vmem:[%s2143_s13] sm:$0xff]  ;;  %v1068_v3 = vld [vmem:[%s2143_s13 + $0x8] sm:$0xff] }
  0x1d   : > { %1518 = vmatmul.msk.f32.vlgmr.msra.gmra.mxu0 %vm560_vm0, %v1852_v8  ;;  %v1658_v4 = vld [vmem:[%s2133_s3 + $0x68] sm:$0xf] }
  0x1e   : > { %v919_v7 = vsel %vm662_vm1, %v911_v6, 0 }
  0x25   : > { %1519 = vmatmul.msk.f32.gmra.mxu0 %vm560_vm0, %v1856_v9 }
  0x9a   : > { %v584_v10 = vpop.f32.mrf.mxu0 }
  0xa2   : > { %v587_v14 = vpop.f32.mrf.mxu0 }
  0xa3   : > { %609 = vmatpush.msra.mxu1 %v587_v14  ;;  %638 = vmatpush.msra.mxu3 %v587_v14 }
  0xa4   : > { %726 = vmatpush.msra.mxu2 %v587_v14  ;;  %v1112_v14 = vld [vmem:[%s2132_s2 + $0x28] sm:$0xff] }
  0xa5   : > { %610 = vmatpush.msra.mxu1 %v584_v10  ;;  %639 = vmatpush.msra.mxu3 %v584_v10 }
  0xa6   : > { %727 = vmatpush.msra.mxu2 %v584_v10  ;;  %1520 = vmatmul.msk.f32.vlgmr.msra.gmra.mxu1 %vm591_vm2, %v590_v15  ;;  %v1114_v10 = vld [vmem:[%s2132_s2 + $0x38] sm:$0xff]  ;;  %v1009_v15 = vunpack.c.l.b16 %v1582_v13 }
  0xa7   : > { %1522 = vmatmul.msk.f32.vlgmr.msra.gmra.mxu3 %vm591_vm2, %v1521_v16  ;;  %1537 = vmatmul.msk.f32.vlgmr.msra.gmra.mxu2 %vm591_vm2, %v1536_v17  ;;  %v1687_v17 = vld [vmem:[%s2137_s7 + $0x14] sm:$0xff] }
  0xa8   : > { %700 = vmatpush.bf16.msrb.mxu1 %v692_v18  ;;  %672 = vmatpush.bf16.msrb.mxu3 %v664_v25  ;;  %v1012_v16 = vpack.c.b16 %v1009_v15, %v1009_v15  ;;  %v1108_v25 = vld [vmem:[%s2132_s2 + $0x8] sm:$0xff]  ;;  %v1694_v13 = vld [vmem:[%s2133_s3 + $0x18] sm:$0xff]  ;;  %v1700_v15 = vld [vmem:[%s2133_s3 + $0x50] sm:$0xff] }
  0xa9   : > { %758 = vmatpush.bf16.msrb.mxu2 %v750_v28  ;;  %v1107_v28 = vld [vmem:[%s2132_s2] sm:$0xff] }
  0xaa   : > { %v1019_v18 = vsel %vm662_vm1, %v1012_v16, 0  ;;  %v1693_v16 = vld [vmem:[%s2133_s3 + $0x10] sm:$0xff] }
  0xac   : > { %701 = vmatpush.bf16.msrb.mxu1 %v1682_v21  ;;  %673 = vmatpush.bf16.msrb.mxu3 %v1683_v29  ;;  %v1690_v21 = vld [vmem:[%s2137_s7 + $0x30] sm:$0xff]  ;;  %v802_v29 = vld [vmem:[%s2146_s16] sm:$0xff] }
  0xad   : > { %759 = vmatpush.bf16.msrb.mxu2 %v1684_v31 }
  0xb0   : > { %822 = vmatpush.msra.mxu1 %v813_v27  ;;  %v803_v27 = vld [vmem:[%s2146_s16 + $0x8] sm:$0xff] }
  0xb1   : > { %926 = vmatpush.bf16.msra.mxu2 %v919_v7 }
  0xb2   : > { %823 = vmatpush.msra.mxu1 %v812_v30 }
  0xb4   : > { %824 = vmatpush.msra.mxu1 %v811_v32 }
  0xb5   : > { %927 = vmatpush.bf16.msra.mxu2 %v1688_v11  ;;  %v1697_v11 = vld [vmem:[%s2133_s3 + $0x34] sm:$0xff] }
  0xb6   : > { %825 = vmatpush.msra.mxu1 %v810_v33 }
  0xb8   : > { %826 = vmatpush.msra.mxu1 %v809_v34 }
  0xb9   : > { %928 = vmatpush.bf16.msra.mxu2 %v1687_v17  ;;  %v1695_v17 = vld [vmem:[%s2133_s3 + $0x24] sm:$0xff] }
  0xba   : > { %827 = vmatpush.msra.mxu1 %v808_v35 }
  0xbc   : > { %828 = vmatpush.msra.mxu1 %v807_v36 }
  0xbe   : > { %829 = vmatpush.msra.mxu1 %v806_v37 }
 0x123   : > { %v612_v38 = vpop.f32.mrf.mxu1 }
 0x124   : > { %v615_v39 = vpack.c.bf16 %v612_v38, %v612_v38 }
 0x126   : > { %1535 = vmatmul.msk.bf16.vlgmr.msrb.gmra.mxu1 %vm658_vm3, %v615_v39 }
 0x127   : > { %1026 = vmatpush.bf16.msrb.mxu1 %v1019_v18  ;;  %v1699_v18 = vld [vmem:[%s2133_s3 + $0x48] sm:$0xff] }
 0x12a   : > { %v641_v40 = vpop.f32.mrf.mxu3  ;;  %v729_v41 = vpop.f32.mrf.mxu2 }
 0x12b   : > { %v644_v42 = vpack.c.bf16 %v641_v40, %v641_v40  ;;  %v732_v43 = vpack.c.bf16 %v729_v41, %v729_v41  ;;  %1027 = vmatpush.bf16.msrb.mxu1 %v1690_v21  ;;  %v1691_v21 = vld [vmem:[%s2133_s3] sm:$0xff] }
 0x12d   : > { %1530 = vmatmul.msk.bf16.vlgmr.msrb.gmra.mxu3 %vm658_vm3, %v644_v42  ;;  %1545 = vmatmul.msk.bf16.vlgmr.msrb.gmra.mxu2 %vm658_vm3, %v732_v43  ;;  %v1712_v42 = vld [vmem:[%s2138_s8] ss:$0 sm:$0xff]  ;;  %v1611_v43 = vld [vmem:[%s2133_s3 + $0x44] sm:$0xf] }
 0x12f   : > { %1028 = vmatpush.bf16.msrb.mxu1 %v1689_v26  ;;  %v1101_v26 = vld [vmem:[%s2144_s14 + $0x10] sm:$0xff] }
 0x136   : > { %1548 = vmatmul.msk.f32.vlgmr.msra.gmra.mxu1 %vm560_vm0, %v1852_v8 }
 0x13e   : > { %1549 = vmatmul.msk.f32.gmra.mxu1 %vm560_vm0, %v1856_v9 }
 0x1a3   : > { %v703_v44 = vpop.f32.mrf.mxu1 }
 0x1ab   : > { %v705_v45 = vpop.f32.mrf.mxu1 }
 0x1b0   : > { %v675_v46 = vpop.f32.mrf.mxu3  ;;  %v761_v47 = vpop.f32.mrf.mxu2 }
 0x1b1   : > { %v704_v48 = vadd.f32 %v703_v44, %v675_v46 }
 0x1b3   : > { %v765_v51 = vadd.f32 %v761_v47, %v704_v48  ;;  %v831_v52 = vpop.f32.mrf.mxu1 }
 0x1b5   : > { %v770_v53 = vadd.f32 %v1711_v49, %v765_v51 }
 0x1b7   : > { %vm771_vm4 = vcmp.ge.f32.partialorder %v770_v53, 0.0  ;;  %v772_v55 = vmul.f32 0.05, %v770_v53 }
 0x1b8   : > { %v677_v57 = vpop.f32.mrf.mxu3  ;;  %v763_v58 = vpop.f32.mrf.mxu2 }
 0x1b9   : > { %v773_v59 = vsel %vm771_vm4, %v770_v53, %v772_v55  ;;  %v1599_v57 = vld [vmem:[%s2152_s18 + $0x10] sm:$0xff] }
 0x1ba   : > { %1546 = vmatpush.msk.msra.mxu3 %vm662_vm1, %v773_v59  ;;  %v1646_v59 = vld [vmem:[%s2152_s18 + $0x20] sm:$0xff] }
 0x1bb   : > { %1547 = vmatmul.msk.f32.vlgmr.msra.gmra.mxu3 %vm775_vm5, %v774_v56  ;;  %v834_v61 = vpop.f32.mrf.mxu1  ;;  %v1138_v56 = vld [vmem:[%s2152_s18] sm:$0xff] }
 0x1bc   : > { %855 = vmatpush.msrb.mxu0 %v834_v61  ;;  %886 = vmatpush.msrb.mxu3 %v834_v61 }
 0x1be   : > { %856 = vmatpush.msrb.mxu0 %v831_v52  ;;  %887 = vmatpush.msrb.mxu3 %v831_v52 }
 0x1bf   : > { %1550 = vmatmul.msk.f32.vlgmr.msrb.gmra.mxu0 %vm591_vm2, %v837_v62 }
 0x1c0   : > { %987 = vmatpush.msra.mxu3 %v834_v61  ;;  %960 = vmatpush.bf16.msra.mxu0 %v953_v63  ;;  %v1698_v63 = vld [vmem:[%s2133_s3 + $0x3c] sm:$0xff] }
 0x1c2   : > { %988 = vmatpush.msra.mxu3 %v831_v52 }
 0x1c3   : > { %1552 = vmatmul.msk.f32.vlgmr.msrb.gmra.mxu3 %vm591_vm2, %v1551_v0  ;;  %v1139_v0 = vld [vmem:[%s2152_s18 + $0x8] sm:$0xff] }
 0x1c4   : > { %961 = vmatpush.bf16.msra.mxu0 %v1686_v1  ;;  %1059 = vmatpush.msrb.mxu3 %v805_v22  ;;  %v1600_v1 = vld [vmem:[%s2152_s18 + $0x18] sm:$0xff]  ;;  %v1105_v22 = vld [vmem:[%s2144_s14 + $0x30] sm:$0xff] }
 0x1c6   : > { %1060 = vmatpush.msrb.mxu3 %v804_v24  ;;  %v1103_v24 = vld [vmem:[%s2144_s14 + $0x20] sm:$0xff] }
 0x1c8   : > { %962 = vmatpush.bf16.msra.mxu0 %v1685_v5  ;;  %1061 = vmatpush.msrb.mxu3 %v803_v27  ;;  %v1377_v5 = vunpack.c.l.b16 %v1658_v4  ;;  %v1100_v27 = vld [vmem:[%s2144_s14 + $0x8] sm:$0xff] }
 0x1ca   : > { %1062 = vmatpush.msrb.mxu3 %v802_v29  ;;  %v1382_v6 = vpack.c.b16 %v1377_v5, %v1377_v5 }
 0x1cb   : > { %1577 = vmatmul.msk.f32.vlgmr.msra.gmra.mxu3 %vm591_vm2, %v1576_v2  ;;  %v1647_v2 = vld [vmem:[%s2152_s18 + $0x28] sm:$0xff] }
 0x1cc   : > { %1123 = vmatpush.msrb.mxu0 %v1114_v10  ;;  %v1391_v7 = vsel %vm662_vm1, %v1382_v6, 0  ;;  %v1702_v10 = vld [vmem:[%s2133_s3 + $0x60] sm:$0xff] }
 0x1ce   : > { %1124 = vmatpush.msrb.mxu0 %v1113_v12  ;;  %v1701_v12 = vld [vmem:[%s2133_s3 + $0x58] sm:$0xff] }
 0x1d0   : > { %1125 = vmatpush.msrb.mxu0 %v1112_v14  ;;  %v1696_v14 = vld [vmem:[%s2133_s3 + $0x2c] sm:$0xff] }
 0x1d2   : > { %1126 = vmatpush.msrb.mxu0 %v1111_v19  ;;  %v1692_v19 = vld [vmem:[%s2133_s3 + $0x8] sm:$0xff] }
 0x1d4   : > { %1127 = vmatpush.msrb.mxu0 %v1110_v20  ;;  %v1106_v20 = vld [vmem:[%s2144_s14 + $0x38] sm:$0xff] }
 0x1d6   : > { %1128 = vmatpush.msrb.mxu0 %v1109_v23  ;;  %v1104_v23 = vld [vmem:[%s2144_s14 + $0x28] sm:$0xff] }
 0x1d8   : > { %1129 = vmatpush.msrb.mxu0 %v1108_v25  ;;  %v1102_v25 = vld [vmem:[%s2144_s14 + $0x18] sm:$0xff] }
 0x1da   : > { %1130 = vmatpush.msrb.mxu0 %v1107_v28  ;;  %v1099_v28 = vld [vmem:[%s2144_s14] sm:$0xff] }
 0x23c   : > { %v858_v30 = vpop.f32.mrf.mxu0 }
 0x23d   : > { %v861_v31 = vpack.c.bf16 %v858_v30, %v858_v30 }
 0x23e   : > { %v799_v32 = vpop.f32.mrf.mxu3 }
 0x23f   : > { %1575 = vmatmul.msk.bf16.vlgmr.msra.gmra.mxu0 %vm914_vm6, %v861_v31  ;;  %1592 = vmatmul.msk.f32.vlgmr.msrb.gmra.mxu3 %vm1043_vm7, %v799_v32 }
 0x246   : > { %v889_v33 = vpop.f32.mrf.mxu3 }
 0x247   : > { %v892_v34 = vpack.c.bf16 %v889_v33, %v889_v33 }
 0x249   : > { %1566 = vmatmul.msk.bf16.vlgmr.msra.gmra.mxu2 %vm914_vm6, %v892_v34 }
 0x24e   : > { %v990_v35 = vpop.f32.mrf.mxu3 }
 0x24f   : > { %v993_v36 = vpack.c.bf16 %v990_v35, %v990_v35  ;;  %1595 = vmatmul.msk.f32.vlgmr.msrb.gmra.mxu0 %vm560_vm0, %v1852_v8  ;;  %v1178_v8 = vld [vmem:[%s2133_s3 + $0x20] sm:$0xf] }
 0x250   : > { %v1287_v46 = vunpack.c.l.b16 %v1178_v8  ;;  %v1713_v8 = vld [vmem:[%s2134_s4] ss:$0 sm:$0xff] }
 0x251   : > { %1591 = vmatmul.msk.bf16.vlgmr.msrb.gmra.mxu1 %vm914_vm6, %v993_v36 }
 0x252   : > { %v1292_v53 = vpack.c.b16 %v1287_v46, %v1287_v46 }
 0x254   : > { %v1301_v62 = vsel %vm662_vm1, %v1292_v53, 0 }
 0x257   : > { %1596 = vmatmul.msk.f32.gmra.mxu0 %vm560_vm0, %v1856_v9  ;;  %v1239_v9 = vunpack.c.l.b16 %v1611_v43 }
 0x259   : > { %v1244_v52 = vpack.c.b16 %v1239_v9, %v1239_v9 }
 0x25b   : > { %v1254_v61 = vsel %vm662_vm1, %v1244_v52, 0 }
 0x2bc   : > { %v964_v37 = vpop.f32.mrf.mxu0 }
 0x2c2   : > { %v1064_v49 = vpop.f32.mrf.mxu3 }
 0x2c4   : > { %v966_v38 = vpop.f32.mrf.mxu0 }
 0x2cc   : > { %v930_v39 = vpop.f32.mrf.mxu2  ;;  %v1132_v40 = vpop.f32.mrf.mxu0 }
 0x2cd   : > { %v965_v41 = vadd.f32 %v964_v37, %v930_v39 }
 0x2ce   : > { %v1030_v44 = vpop.f32.mrf.mxu1 }
 0x2cf   : > { %v1034_v45 = vadd.f32 %v1030_v44, %v965_v41 }
 0x2d1   : > { %v1039_v47 = vadd.f32 %v1712_v42, %v1034_v45 }
 0x2d3   : > { %vm1040_vm8 = vcmp.ge.f32.partialorder %v1039_v47, 0.0  ;;  %v1041_v48 = vmul.f32 0.05, %v1039_v47 }
 0x2d4   : > { %v1135_v50 = vpop.f32.mrf.mxu0  ;;  %v932_v51 = vpop.f32.mrf.mxu2 }
 0x2d5   : > { %v1042_v54 = vsel %vm1040_vm8, %v1039_v47, %v1041_v48  ;;  %1160 = vmatpush.msra.mxu3 %v1135_v50  ;;  %1202 = vmatpush.msra.mxu1 %v1135_v50 }
 0x2d6   : > { %v1065_v55 = vadd.f32 %v1064_v49, %v1042_v54  ;;  %1340 = vmatpush.msra.mxu0 %v1135_v50  ;;  %v1032_v58 = vpop.f32.mrf.mxu1 }
 0x2d7   : > { %1161 = vmatpush.msra.mxu3 %v1132_v40  ;;  %1203 = vmatpush.msra.mxu1 %v1132_v40 }
 0x2d8   : > { %1091 = vmatpush.msrb.mxu2 %v1065_v55  ;;  %1341 = vmatpush.msra.mxu0 %v1132_v40 }
 0x2d9   : > { %1597 = vmatmul.msk.f32.vlgmr.msra.gmra.mxu3 %vm591_vm2, %v1138_v56  ;;  %1601 = vmatmul.msk.f32.vlgmr.msra.gmra.mxu1 %vm591_vm2, %v1599_v57 }
 0x2da   : > { %1648 = vmatmul.msk.f32.vlgmr.msra.gmra.mxu0 %vm591_vm2, %v1646_v59  ;;  %1593 = vmatmul.msk.f32.vlgmr.msrb.gmra.mxu2 %vm1069_vm9, %v1067_v60 }
 0x2db   : > { %1259 = vmatpush.bf16.msra.mxu2 %v1254_v61  ;;  %1306 = vmatpush.bf16.msrb.mxu3 %v1301_v62 }
 0x2dc   : > { %1396 = vmatpush.bf16.msrb.mxu1 %v1391_v7 }
 0x2df   : > { %1260 = vmatpush.bf16.msra.mxu2 %v1698_v63  ;;  %1307 = vmatpush.bf16.msrb.mxu3 %v1694_v13 }
 0x2e0   : > { %1397 = vmatpush.bf16.msrb.mxu1 %v1702_v10 }
 0x2e1   : > { %1598 = vmatmul.msk.f32.gmra.mxu3 %vm591_vm2, %v1139_v0  ;;  %1602 = vmatmul.msk.f32.gmra.mxu1 %vm591_vm2, %v1600_v1 }
 0x2e2   : > { %1649 = vmatmul.msk.f32.gmra.mxu0 %vm591_vm2, %v1647_v2  ;;  %1594 = vmatmul.msk.f32.gmra.mxu2 %vm1069_vm9, %v1068_v3 }
 0x2e3   : > { %1261 = vmatpush.bf16.msra.mxu2 %v1697_v11  ;;  %1308 = vmatpush.bf16.msrb.mxu3 %v1693_v16 }
 0x2e4   : > { %1398 = vmatpush.bf16.msrb.mxu1 %v1701_v12 }
 0x2e7   : > { %1262 = vmatpush.bf16.msra.mxu2 %v1696_v14  ;;  %1309 = vmatpush.bf16.msrb.mxu3 %v1692_v19 }
 0x2e8   : > { %1399 = vmatpush.bf16.msrb.mxu1 %v1700_v15 }
 0x2eb   : > { %1263 = vmatpush.bf16.msra.mxu2 %v1695_v17  ;;  %1310 = vmatpush.bf16.msrb.mxu3 %v1691_v21 }
 0x2ec   : > { %1400 = vmatpush.bf16.msrb.mxu1 %v1699_v18 }
 0x2ef   : > { %1435 = vmatpush.msrb.mxu2 %v1106_v20 }
 0x2f1   : > { %1436 = vmatpush.msrb.mxu2 %v1105_v22 }
 0x2f3   : > { %1437 = vmatpush.msrb.mxu2 %v1104_v23 }
 0x2f5   : > { %1438 = vmatpush.msrb.mxu2 %v1103_v24 }
 0x2f7   : > { %1439 = vmatpush.msrb.mxu2 %v1102_v25 }
 0x2f9   : > { %1440 = vmatpush.msrb.mxu2 %v1101_v26 }
 0x2fb   : > { %1441 = vmatpush.msrb.mxu2 %v1100_v27 }
 0x2fd   : > { %1442 = vmatpush.msrb.mxu2 %v1099_v28 }
 0x356   : > { %v1205_v29 = vpop.f32.mrf.mxu1 }
 0x357   : > { %v1343_v30 = vpop.f32.mrf.mxu0 }
 0x35c   : > { %v1163_v31 = vpop.f32.mrf.mxu3 }
 0x35d   : > { %v1093_v38 = vpop.f32.mrf.mxu2 }
 0x35e   : > { %v1208_v32 = vpop.f32.mrf.mxu1 }
 0x35f   : > { %v1211_v33 = vpack.c.bf16 %v1208_v32, %v1205_v29  ;;  %v1346_v34 = vpop.f32.mrf.mxu0 }
 0x360   : > { %v1349_v35 = vpack.c.bf16 %v1346_v34, %v1343_v30 }
 0x361   : > { %1628 = vmatmul.msk.bf16.vlgmr.msra.gmra.mxu2 %vm1249_vm10, %v1211_v33 }
 0x362   : > { %1675 = vmatmul.msk.bf16.vlgmr.msrb.gmra.mxu1 %vm1249_vm10, %v1349_v35 }
 0x364   : > { %v1166_v36 = vpop.f32.mrf.mxu3 }
 0x365   : > { %v1169_v37 = vpack.c.bf16 %v1166_v36, %v1163_v31  ;;  %v1096_v39 = vpop.f32.mrf.mxu2 }
 0x367   : > { %1645 = vmatmul.msk.bf16.vlgmr.msrb.gmra.mxu3 %vm1249_vm10, %v1169_v37 }
 0x371   : > { %1676 = vmatmul.msk.f32.vlgmr.msrb.gmra.mxu2 %vm560_vm0, %v1093_v38 }
 0x379   : > { %1677 = vmatmul.msk.f32.gmra.mxu2 %vm560_vm0, %v1096_v39 }
 0x3df   : > { %v1402_v42 = vpop.f32.mrf.mxu1 }
 0x3e4   : > { %v1265_v40 = vpop.f32.mrf.mxu2 }
 0x3e7   : > { %v1404_v50 = vpop.f32.mrf.mxu1 }
 0x3ea   : > { %v1312_v41 = vpop.f32.mrf.mxu3 }
 0x3eb   : > { %v1313_v43 = vadd.f32 %v1312_v41, %v1265_v40 }
 0x3ec   : > { %v1267_v44 = vpop.f32.mrf.mxu2 }
 0x3ed   : > { %v1407_v45 = vadd.f32 %v1402_v42, %v1313_v43 }
 0x3ef   : > { %v1413_v9 = vadd.f32 %v1713_v8, %v1407_v45 }
 0x3f1   : > { %vm1415_vm11 = vcmp.ge.f32.partialorder %v1413_v9, 0.0  ;;  %v1417_v46 = vmul.f32 0.05, %v1413_v9 }
 0x3f2   : > { %v1314_v47 = vpop.f32.mrf.mxu3 }
 0x3f3   : > { %v1315_v48 = vadd.f32 %v1314_v47, %v1267_v44  ;;  %v1419_v49 = vsel %vm1415_vm11, %v1413_v9, %v1417_v46 }
 0x3f4   : > { %v1444_v51 = vpop.f32.mrf.mxu2 }
 0x3f5   : > { %v1408_v52 = vadd.f32 %v1404_v50, %v1315_v48  ;;  %v1445_v53 = vadd.f32 %v1444_v51, %v1419_v49 }
 0x3f7   : > { %v1414_v54 = vadd.f32 %v1713_v8, %v1408_v52  ;;  %v1450_v55 = vmul.f32 0.33333334, %v1445_v53 }
 0x3f9   : > { %1452 = vst [vmem:[%s548_s26] sm:$0xff] %v1450_v55  ;;  %vm1416_vm12 = vcmp.ge.f32.partialorder %v1414_v54, 0.0  ;;  %v1418_v56 = vmul.f32 0.05, %v1414_v54 }
 0x3fb   : > { %v1420_v57 = vsel %vm1416_vm12, %v1414_v54, %v1418_v56 }
 0x3fc   : > { %v1447_v58 = vpop.f32.mrf.mxu2 }
 0x3fd   : > { %v1448_v59 = vadd.f32 %v1447_v58, %v1420_v57 }
 0x3ff   : > { %v1451_v60 = vmul.f32 0.33333334, %v1448_v59 }
 0x401   : > { %1453 = vst [vmem:[%s548_s26 + $0x8] sm:$0xff] %v1451_v60 }
 0x402 PF: > { %s27_s24 = sadd.s32 1, %s1720_s24  }
 0x403   : > { %p24_p4 = scmp.ge.s32.totalorder %s27_s24, 4  }
 0x405   :  { %26 = sbr.rel (!%p24_p4) target bundleno = 3 (0x3), region = 130 }

</bundles_post_ra>
